<compile_context>
chip_gen: v7x
topology: tpu7x:2x2x1
jax: 0.10.0
libtpu: 0.0.40
codegen_flags: <defaults>
</compile_context>

<pallas_src>
import functools

import jax
import jax.numpy as jnp
from jax import lax
from jax.experimental import pallas as pl
from jax.experimental.pallas import tpu as pltpu


# ---------------------------------------------------------------------------
# Helpers
# ---------------------------------------------------------------------------
def _round_up(n, m):
    return ((n + m - 1) // m) * m


def _pick_block_b(B, target=512):
    """Largest batch tile <= target that divides B (multiple of 8 if possible)."""
    if B <= target:
        return B
    for cand in range(target, 0, -8):
        if cand % 8 == 0 and B % cand == 0:
            return cand
    return B


# ---------------------------------------------------------------------------
# Kernels
# ---------------------------------------------------------------------------
def _lab_head_kernel(img_ref, txt_ref, wli_ref, wlt_ref, out_ref):
    # logits = F.normalize(cat(img, txt), dim=1) @ W_lab^T
    #        = (img @ Wli + txt @ Wlt) * rsqrt(||img||^2 + ||txt||^2)
    img = img_ref[...]                                        # (Bb, Fi) bf16
    txt = txt_ref[...]                                        # (Bb, Ft) bf16
    img32 = img.astype(jnp.float32)
    txt32 = txt.astype(jnp.float32)
    ss = (jnp.sum(img32 * img32, axis=-1, keepdims=True)
          + jnp.sum(txt32 * txt32, axis=-1, keepdims=True))   # (Bb, 1) f32
    inv = lax.rsqrt(jnp.maximum(ss, 1e-24))                   # matches F.normalize eps=1e-12
    logits = (jnp.dot(img, wli_ref[...], preferred_element_type=jnp.float32)
              + jnp.dot(txt, wlt_ref[...], preferred_element_type=jnp.float32))
    out_ref[...] = (logits * inv).astype(out_ref.dtype)


def _heads_kernel(img_ref, txt_ref, wpi_ref, wpt_ref, b_ref, wk_ref,
                  logits_ref, z_ref):
    # Per (head, batch-tile) grid point:
    #   z      = img @ Wproj_img[h] + txt @ Wproj_txt[h] + b[h]   (single-Linear "MLP")
    #   zn     = F.normalize(z, dim=1)
    #   logits = zn @ Wproto[h]        (prototype rows unit-norm, K lane-padded)
    z = (jnp.dot(img_ref[...], wpi_ref[0], preferred_element_type=jnp.float32)
         + jnp.dot(txt_ref[...], wpt_ref[0], preferred_element_type=jnp.float32)
         + b_ref[0])                                          # (Bb, P) f32
    inv = lax.rsqrt(jnp.maximum(jnp.sum(z * z, axis=-1, keepdims=True), 1e-24))
    zn = z * inv
    logits_ref[0] = jnp.dot(zn.astype(wk_ref.dtype), wk_ref[0],
                            preferred_element_type=jnp.float32).astype(logits_ref.dtype)
    z_ref[0] = zn.astype(z_ref.dtype)


# ---------------------------------------------------------------------------
# Pallas wrappers
# ---------------------------------------------------------------------------
def lab_head(img_bf, txt_bf, lab_params, *, block_b=None):
    """img_bf: (B, Fi) bf16, txt_bf: (B, Ft) bf16 -> (B, Lpad) f32 (lane-dense)."""
    B, Fi = img_bf.shape
    Ft = txt_bf.shape[1]
    w_img = lab_params["w_img"]      # (Fi, Lpad) bf16, pre-transposed/padded at init
    w_txt = lab_params["w_txt"]      # (Ft, Lpad) bf16
    Lp = w_img.shape[1]
    bb = block_b or _pick_block_b(B)
    return pl.pallas_call(
        _lab_head_kernel,
        out_shape=jax.ShapeDtypeStruct((B, Lp), jnp.float32),
        grid=(B // bb,),
        in_specs=[
            pl.BlockSpec((bb, Fi), lambda b: (b, 0)),
            pl.BlockSpec((bb, Ft), lambda b: (b, 0)),
            pl.BlockSpec((Fi, Lp), lambda b: (0, 0)),
            pl.BlockSpec((Ft, Lp), lambda b: (0, 0)),
        ],
        out_specs=pl.BlockSpec((bb, Lp), lambda b: (b, 0)),
        compiler_params=pltpu.CompilerParams(dimension_semantics=("parallel",)),
    )(img_bf, txt_bf, w_img, w_txt)


def fused_heads(img_bf, txt_bf, head_params, *, block_b=None):
    """
    One pallas_call over all 2*H heads (unlab heads 0..H-1, overcluster heads H..2H-1).
      img_bf:     (B, Fi) bf16
      txt_bf:     (B, Ft) bf16
      w_proj_img: (2H, Fi, P) bf16   pre-transposed projector weights (img part)
      w_proj_txt: (2H, Ft, P) bf16   pre-transposed projector weights (text part)
      b_proj:     (2H, 1, P)  f32
      w_proto:    (2H, P, Kpad) bf16 pre-transposed, zero-padded, rows unit-norm
    returns logits (2H, B, Kpad) f32 and proj feats (2H, B, P) f32.
    """
    B, Fi = img_bf.shape
    Ft = txt_bf.shape[1]
    wpi = head_params["w_proj_img"]
    wpt = head_params["w_proj_txt"]
    bpr = head_params["b_proj"]
    wk = head_params["w_proto"]
    Ht, _, P = wpi.shape
    Kp = wk.shape[2]
    bb = block_b or _pick_block_b(B)
    # Head axis OUTER, batch axis INNER: weight blocks are unchanged along the
    # inner axis so Pallas DMAs each head's weights once; both axes "parallel"
    # so v7x megacore can shard them.
    # TODO(synk): at production B, also set vmem_limit_bytes explicitly for
    # v7x's 64 MiB VMEM (block_b tiling already keeps the working set bounded).
    return pl.pallas_call(
        _heads_kernel,
        out_shape=(
            jax.ShapeDtypeStruct((Ht, B, Kp), jnp.float32),
            jax.ShapeDtypeStruct((Ht, B, P), jnp.float32),
        ),
        grid=(Ht, B // bb),
        in_specs=[
            pl.BlockSpec((bb, Fi), lambda h, b: (b, 0)),
            pl.BlockSpec((bb, Ft), lambda h, b: (b, 0)),
            pl.BlockSpec((1, Fi, P), lambda h, b: (h, 0, 0)),
            pl.BlockSpec((1, Ft, P), lambda h, b: (h, 0, 0)),
            pl.BlockSpec((1, 1, P), lambda h, b: (h, 0, 0)),
            pl.BlockSpec((1, P, Kp), lambda h, b: (h, 0, 0)),
        ],
        out_specs=(
            pl.BlockSpec((1, bb, Kp), lambda h, b: (h, b, 0)),
            pl.BlockSpec((1, bb, P), lambda h, b: (h, b, 0)),
        ),
        compiler_params=pltpu.CompilerParams(
            dimension_semantics=("parallel", "parallel")),
    )(img_bf, txt_bf, wpi, wpt, bpr, wk)


def multi_head_concat_forward(img_feats, text_feats, params, *, meta):
    """Pallas implementation of MultiHeadConcat.forward_heads (on encoder feats)."""
    H = meta["num_heads"]
    L = meta["num_labeled"]
    K_u = meta["num_unlab"]
    K_o = meta["num_over"]

    # bf16 activations for the kernels (halves feats DMA, enables bf16 MXU rate);
    # the feature concat is never materialized -- kernels take img/txt separately.
    img_bf = img_feats.astype(jnp.bfloat16)
    txt_bf = text_feats.astype(jnp.bfloat16)

    lab_logits = lab_head(img_bf, txt_bf, params["lab"])[:, :L]
    logits_all, z_all = fused_heads(img_bf, txt_bf, params["heads"])

    return {
        "img_text_logits_lab": lab_logits,
        "img_text_logits_unlab": logits_all[:H, :, :K_u],
        "img_text_proj_feats_unlab": z_all[:H],
        "img_text_logits_unlab_over": logits_all[H:, :, :K_o],
        "img_text_proj_feats_unlab_over": z_all[H:],
        "img_feats": img_feats,
        "text_feats": text_feats,
    }


# ---------------------------------------------------------------------------
# Deterministic parameter init (synthetic; matches the module's shapes).
# Weights are stored pre-transposed / pre-split / lane-padded / bf16 so the
# forward path does zero weight reshaping.
# ---------------------------------------------------------------------------
def _linear_init(key, out_dim, in_dim):
    bound = 1.0 / jnp.sqrt(jnp.float32(in_dim))
    kw, kb = jax.random.split(key)
    w = jax.random.uniform(kw, (out_dim, in_dim), jnp.float32, -bound, bound)
    b = jax.random.uniform(kb, (out_dim,), jnp.float32, -bound, bound)
    return w, b


def _prototype_init(key, num_proto, dim):
    bound = 1.0 / jnp.sqrt(jnp.float32(dim))
    w = jax.random.uniform(key, (num_proto, dim), jnp.float32, -bound, bound)
    # normalize_prototypes(): rows to unit L2 norm (done once at init, like torch)
    return w / jnp.maximum(jnp.linalg.norm(w, axis=1, keepdims=True), 1e-12)


def init_params(key, img_dim, txt_dim, proj_dim, num_labeled, num_unlabeled,
                overcluster, num_heads):
    feat_dim = img_dim + txt_dim
    k_lab, k_u, k_o = jax.random.split(key, 3)

    # Labeled prototypes: (L, F) row-normalized -> stored (F, Lpad), split img/txt.
    Lp = _round_up(num_labeled, 128)
    w_lab = _prototype_init(k_lab, num_labeled, feat_dim)              # (L, F)
    w_lab_t = jnp.zeros((feat_dim, Lp), jnp.float32).at[:, :num_labeled].set(w_lab.T)
    lab = {
        "w_img": w_lab_t[:img_dim].astype(jnp.bfloat16),
        "w_txt": w_lab_t[img_dim:].astype(jnp.bfloat16),
    }

    num_over = num_unlabeled * overcluster
    Kp = _round_up(max(num_unlabeled, num_over), 128)

    def make_group(k, num_proto):
        ks = jax.random.split(k, 2 * num_heads)
        wpi, wpt, bpr, wk = [], [], [], []
        for h in range(num_heads):
            w, b = _linear_init(ks[2 * h], proj_dim, feat_dim)         # (P, F), (P,)
            wt = w.T                                                   # (F, P)
            wpi.append(wt[:img_dim])
            wpt.append(wt[img_dim:])
            bpr.append(b[None, :])
            proto = _prototype_init(ks[2 * h + 1], num_proto, proj_dim)  # (K, P)
            proto_t = jnp.zeros((proj_dim, Kp), jnp.float32).at[:, :num_proto].set(proto.T)
            wk.append(proto_t)
        return jnp.stack(wpi), jnp.stack(wpt), jnp.stack(bpr), jnp.stack(wk)

    wpi_u, wpt_u, b_u, wk_u = make_group(k_u, num_unlabeled)
    wpi_o, wpt_o, b_o, wk_o = make_group(k_o, num_over)

    heads = {
        "w_proj_img": jnp.concatenate([wpi_u, wpi_o]).astype(jnp.bfloat16),  # (2H, Fi, P)
        "w_proj_txt": jnp.concatenate([wpt_u, wpt_o]).astype(jnp.bfloat16),  # (2H, Ft, P)
        "b_proj": jnp.concatenate([b_u, b_o]).astype(jnp.float32),           # (2H, 1, P)
        "w_proto": jnp.concatenate([wk_u, wk_o]).astype(jnp.bfloat16),       # (2H, P, Kp)
    }
    params = {"lab": lab, "heads": heads}
    meta = {"num_heads": num_heads, "num_labeled": num_labeled,
            "num_unlab": num_unlabeled, "num_over": num_over}
    return params, meta


# ---------------------------------------------------------------------------
# Pure-JAX reference (uses the same bf16-rounded weights/feats; f32 math)
# ---------------------------------------------------------------------------
def _ref_forward(img_feats, text_feats, params, meta):
    H = meta["num_heads"]
    img = img_feats.astype(jnp.bfloat16).astype(jnp.float32)
    txt = text_feats.astype(jnp.bfloat16).astype(jnp.float32)
    feats = jnp.concatenate([img, txt], axis=-1)

    lab = params["lab"]
    w_lab = jnp.concatenate([lab["w_img"], lab["w_txt"]], axis=0).astype(jnp.float32)
    nf = feats / jnp.maximum(jnp.linalg.norm(feats, axis=1, keepdims=True), 1e-12)
    lab_logits = (nf @ w_lab)[:, :meta["num_labeled"]]

    h = params["heads"]
    w_proj = jnp.concatenate([h["w_proj_img"], h["w_proj_txt"]], axis=1).astype(jnp.float32)
    z = jnp.einsum("bf,hfp->hbp", feats, w_proj) + h["b_proj"].astype(jnp.float32)
    zn = z / jnp.maximum(jnp.linalg.norm(z, axis=-1, keepdims=True), 1e-12)
    logits = jnp.einsum("hbp,hpk->hbk", zn, h["w_proto"].astype(jnp.float32))

    return {
        "img_text_logits_lab": lab_logits,
        "img_text_logits_unlab": logits[:H, :, :meta["num_unlab"]],
        "img_text_proj_feats_unlab": zn[:H],
        "img_text_logits_unlab_over": logits[H:, :, :meta["num_over"]],
        "img_text_proj_feats_unlab_over": zn[H:],
    }


# ---------------------------------------------------------------------------
if __name__ == "__main__":
    key = jax.random.PRNGKey(0)

    # Small stand-in dims (real module: img 2048 + text 768 = feat 2816, proj 256).
    B = 8
    IMG_DIM, TXT_DIM = 64, 32
    PROJ_DIM = 32
    NUM_LABELED = 10
    NUM_UNLABELED = 12
    OVERCLUSTER = 3
    NUM_HEADS = 4

    # TODO(synk): the Bio_ClinicalBERT text encoder and torchvision ResNet image
    # encoder are full pretrained backbones with no clean single-kernel Pallas
    # equivalent; synthetic encoder features are fed directly and the head stack
    # (forward_heads) is what is implemented in Pallas.
    k_img, k_txt, k_par = jax.random.split(key, 3)
    img_feats = jax.random.normal(k_img, (B, IMG_DIM), jnp.float32)
    text_feats = jax.random.normal(k_txt, (B, TXT_DIM), jnp.float32)

    params, meta = init_params(
        k_par, IMG_DIM, TXT_DIM, PROJ_DIM, NUM_LABELED, NUM_UNLABELED,
        OVERCLUSTER, NUM_HEADS)

    fwd = jax.jit(functools.partial(multi_head_concat_forward, meta=meta))
    out = fwd(img_feats, text_feats, params)
    out = jax.tree_util.tree_map(jax.block_until_ready, out)

    # Correctness check against a plain-JAX reference (bf16 operands, f32 math).
    ref = _ref_forward(img_feats, text_feats, params, meta)
    for name, ref_val in ref.items():
        got = out[name]
        assert got.shape == ref_val.shape, (name, got.shape, ref_val.shape)
        assert jnp.allclose(got, ref_val, atol=2e-2, rtol=2e-2), (
            name, float(jnp.max(jnp.abs(got - ref_val))))
    assert out["img_feats"].shape == (B, IMG_DIM)
    assert out["text_feats"].shape == (B, TXT_DIM)

    print("KERNEL_OK")
</pallas_src>

<mosaic_0001>
module attributes {stable_mosaic.version = 11 : i64} {
  func.func @_heads_kernel(%arg0: i32, %arg1: i32, %arg2: memref<8x64xbf16, #tpu.memory_space<vmem>>, %arg3: memref<8x32xbf16, #tpu.memory_space<vmem>>, %arg4: memref<1x64x32xbf16, #tpu.memory_space<vmem>>, %arg5: memref<1x32x32xbf16, #tpu.memory_space<vmem>>, %arg6: memref<1x1x32xf32, #tpu.memory_space<vmem>>, %arg7: memref<1x32x128xbf16, #tpu.memory_space<vmem>>, %arg8: memref<1x8x128xf32, #tpu.memory_space<vmem>>, %arg9: memref<1x8x32xf32, #tpu.memory_space<vmem>>) attributes {dimension_semantics = [#tpu.dimension_semantics<parallel>, #tpu.dimension_semantics<parallel>], iteration_bounds = array<i64: 8, 1>, scalar_prefetch = 0 : i64, scratch_operands = 0 : i64, tpu.core_type = #tpu.core_type<tc>, window_params = [{transform_indices = @transform_0, window_bounds = array<i64: 8, 64>}, {transform_indices = @transform_1, window_bounds = array<i64: 8, 32>}, {transform_indices = @transform_2, window_bounds = array<i64: 1, 64, 32>}, {transform_indices = @transform_3, window_bounds = array<i64: 1, 32, 32>}, {transform_indices = @transform_4, window_bounds = array<i64: 1, 1, 32>}, {transform_indices = @transform_5, window_bounds = array<i64: 1, 32, 128>}, {transform_indices = @transform_6, window_bounds = array<i64: 1, 8, 128>}, {transform_indices = @transform_7, window_bounds = array<i64: 1, 8, 32>}]} {
    %c0 = arith.constant 0 : index
    %c0_0 = arith.constant 0 : index
    %0 = vector.load %arg2[%c0, %c0_0] : memref<8x64xbf16, #tpu.memory_space<vmem>>, vector<8x64xbf16>
    %c0_1 = arith.constant 0 : index
    %c0_2 = arith.constant 0 : index
    %c0_3 = arith.constant 0 : index
    %1 = vector.load %arg4[%c0_1, %c0_2, %c0_3] : memref<1x64x32xbf16, #tpu.memory_space<vmem>>, vector<1x64x32xbf16>
    %2 = vector.shape_cast %1 : vector<1x64x32xbf16> to vector<64x32xbf16>
    %cst = arith.constant dense<0.000000e+00> : vector<8x32xf32>
    %3 = tpu.matmul %0, %2, %cst {dimension_numbers = #tpu.dot_dimension_numbers<[1], [0], [0], [1], [0, 0, 1, 1], [], []>} : vector<8x64xbf16>, vector<64x32xbf16>, vector<8x32xf32> -> vector<8x32xf32>
    %c0_4 = arith.constant 0 : index
    %c0_5 = arith.constant 0 : index
    %4 = vector.load %arg3[%c0_4, %c0_5] : memref<8x32xbf16, #tpu.memory_space<vmem>>, vector<8x32xbf16>
    %c0_6 = arith.constant 0 : index
    %c0_7 = arith.constant 0 : index
    %c0_8 = arith.constant 0 : index
    %5 = vector.load %arg5[%c0_6, %c0_7, %c0_8] : memref<1x32x32xbf16, #tpu.memory_space<vmem>>, vector<1x32x32xbf16>
    %6 = vector.shape_cast %5 : vector<1x32x32xbf16> to vector<32x32xbf16>
    %cst_9 = arith.constant dense<0.000000e+00> : vector<8x32xf32>
    %7 = tpu.matmul %4, %6, %cst_9 {dimension_numbers = #tpu.dot_dimension_numbers<[1], [0], [0], [1], [0, 0, 1, 1], [], []>} : vector<8x32xbf16>, vector<32x32xbf16>, vector<8x32xf32> -> vector<8x32xf32>
    %8 = arith.addf %3, %7 : vector<8x32xf32>
    %c0_10 = arith.constant 0 : index
    %c0_11 = arith.constant 0 : index
    %c0_12 = arith.constant 0 : index
    %9 = vector.load %arg6[%c0_10, %c0_11, %c0_12] : memref<1x1x32xf32, #tpu.memory_space<vmem>>, vector<1x1x32xf32>
    %10 = vector.shape_cast %9 : vector<1x1x32xf32> to vector<1x32xf32>
    %11 = vector.broadcast %10 : vector<1x32xf32> to vector<8x32xf32>
    %12 = arith.addf %8, %11 : vector<8x32xf32>
    %13 = arith.mulf %12, %12 : vector<8x32xf32>
    %cst_13 = arith.constant dense<0.000000e+00> : vector<8xf32>
    %14 = vector.multi_reduction <add>, %13, %cst_13 [1] : vector<8x32xf32> to vector<8xf32>
    %15 = vector.shape_cast %14 : vector<8xf32> to vector<8x1xf32>
    %cst_14 = arith.constant 1.000000e-24 : f32
    %16 = vector.broadcast %cst_14 : f32 to vector<8x1xf32>
    %17 = arith.maximumf %15, %16 : vector<8x1xf32>
    %18 = math.rsqrt %17 : vector<8x1xf32>
    %19 = vector.broadcast %18 : vector<8x1xf32> to vector<8x32xf32>
    %20 = arith.mulf %12, %19 : vector<8x32xf32>
    %21 = arith.truncf %20 : vector<8x32xf32> to vector<8x32xbf16>
    %c0_15 = arith.constant 0 : index
    %c0_16 = arith.constant 0 : index
    %c0_17 = arith.constant 0 : index
    %22 = vector.load %arg7[%c0_15, %c0_16, %c0_17] : memref<1x32x128xbf16, #tpu.memory_space<vmem>>, vector<1x32x128xbf16>
    %23 = vector.shape_cast %22 : vector<1x32x128xbf16> to vector<32x128xbf16>
    %cst_18 = arith.constant dense<0.000000e+00> : vector<8x128xf32>
    %24 = tpu.matmul %21, %23, %cst_18 {dimension_numbers = #tpu.dot_dimension_numbers<[1], [0], [0], [1], [0, 0, 1, 1], [], []>} : vector<8x32xbf16>, vector<32x128xbf16>, vector<8x128xf32> -> vector<8x128xf32>
    %c0_19 = arith.constant 0 : index
    %c0_20 = arith.constant 0 : index
    %c0_21 = arith.constant 0 : index
    %25 = vector.load %arg8[%c0_19, %c0_20, %c0_21] : memref<1x8x128xf32, #tpu.memory_space<vmem>>, vector<1x8x128xf32>
    %26 = vector.shape_cast %25 : vector<1x8x128xf32> to vector<8x128xf32>
    %27 = vector.shape_cast %24 : vector<8x128xf32> to vector<1x8x128xf32>
    tpu.vector_store %arg8[%c0_19, %c0_20, %c0_21], %27 {strides = array<i32>} : memref<1x8x128xf32, #tpu.memory_space<vmem>>, vector<1x8x128xf32>,
    %c0_22 = arith.constant 0 : index
    %c0_23 = arith.constant 0 : index
    %c0_24 = arith.constant 0 : index
    %28 = vector.load %arg9[%c0_22, %c0_23, %c0_24] : memref<1x8x32xf32, #tpu.memory_space<vmem>>, vector<1x8x32xf32>
    %29 = vector.shape_cast %28 : vector<1x8x32xf32> to vector<8x32xf32>
    %30 = vector.shape_cast %20 : vector<8x32xf32> to vector<1x8x32xf32>
    tpu.vector_store %arg9[%c0_22, %c0_23, %c0_24], %30 {strides = array<i32>} : memref<1x8x32xf32, #tpu.memory_space<vmem>>, vector<1x8x32xf32>,
    return
  }
  func.func @transform_0(%arg0: i32, %arg1: i32) -> (i32, i32) {
    %c0_i32 = arith.constant 0 : i32
    %c0_i32_0 = arith.constant 0 : i32
    return %arg1, %c0_i32 : i32, i32
  }
  func.func @transform_1(%arg0: i32, %arg1: i32) -> (i32, i32) {
    %c0_i32 = arith.constant 0 : i32
    %c0_i32_0 = arith.constant 0 : i32
    return %arg1, %c0_i32 : i32, i32
  }
  func.func @transform_2(%arg0: i32, %arg1: i32) -> (i32, i32, i32) {
    %c0_i32 = arith.constant 0 : i32
    %c0_i32_0 = arith.constant 0 : i32
    %c0_i32_1 = arith.constant 0 : i32
    return %arg0, %c0_i32, %c0_i32_0 : i32, i32, i32
  }
  func.func @transform_3(%arg0: i32, %arg1: i32) -> (i32, i32, i32) {
    %c0_i32 = arith.constant 0 : i32
    %c0_i32_0 = arith.constant 0 : i32
    %c0_i32_1 = arith.constant 0 : i32
    return %arg0, %c0_i32, %c0_i32_0 : i32, i32, i32
  }
  func.func @transform_4(%arg0: i32, %arg1: i32) -> (i32, i32, i32) {
    %c0_i32 = arith.constant 0 : i32
    %c0_i32_0 = arith.constant 0 : i32
    %c0_i32_1 = arith.constant 0 : i32
    return %arg0, %c0_i32, %c0_i32_0 : i32, i32, i32
  }
  func.func @transform_5(%arg0: i32, %arg1: i32) -> (i32, i32, i32) {
    %c0_i32 = arith.constant 0 : i32
    %c0_i32_0 = arith.constant 0 : i32
    %c0_i32_1 = arith.constant 0 : i32
    return %arg0, %c0_i32, %c0_i32_0 : i32, i32, i32
  }
  func.func @transform_6(%arg0: i32, %arg1: i32) -> (i32, i32, i32) {
    %c0_i32 = arith.constant 0 : i32
    %c0_i32_0 = arith.constant 0 : i32
    return %arg0, %arg1, %c0_i32 : i32, i32, i32
  }
  func.func @transform_7(%arg0: i32, %arg1: i32) -> (i32, i32, i32) {
    %c0_i32 = arith.constant 0 : i32
    %c0_i32_0 = arith.constant 0 : i32
    return %arg0, %arg1, %c0_i32 : i32, i32, i32
  }
}

module attributes {stable_mosaic.version = 11 : i64} {
  func.func @_lab_head_kernel(%arg0: i32, %arg1: memref<8x64xbf16, #tpu.memory_space<vmem>>, %arg2: memref<8x32xbf16, #tpu.memory_space<vmem>>, %arg3: memref<64x128xbf16, #tpu.memory_space<vmem>>, %arg4: memref<32x128xbf16, #tpu.memory_space<vmem>>, %arg5: memref<8x128xf32, #tpu.memory_space<vmem>>) attributes {dimension_semantics = [#tpu.dimension_semantics<parallel>], iteration_bounds = array<i64: 1>, scalar_prefetch = 0 : i64, scratch_operands = 0 : i64, tpu.core_type = #tpu.core_type<tc>, window_params = [{transform_indices = @transform_0, window_bounds = array<i64: 8, 64>}, {transform_indices = @transform_1, window_bounds = array<i64: 8, 32>}, {pipeline_mode = #tpu.pipeline_mode<synchronous>, transform_indices = @transform_2, window_bounds = array<i64: 64, 128>}, {pipeline_mode = #tpu.pipeline_mode<synchronous>, transform_indices = @transform_3, window_bounds = array<i64: 32, 128>}, {transform_indices = @transform_4, window_bounds = array<i64: 8, 128>}]} {
    %c0 = arith.constant 0 : index
    %c0_0 = arith.constant 0 : index
    %0 = vector.load %arg1[%c0, %c0_0] : memref<8x64xbf16, #tpu.memory_space<vmem>>, vector<8x64xbf16>
    %c0_1 = arith.constant 0 : index
    %c0_2 = arith.constant 0 : index
    %1 = vector.load %arg2[%c0_1, %c0_2] : memref<8x32xbf16, #tpu.memory_space<vmem>>, vector<8x32xbf16>
    %2 = arith.extf %0 : vector<8x64xbf16> to vector<8x64xf32>
    %3 = arith.extf %1 : vector<8x32xbf16> to vector<8x32xf32>
    %4 = arith.mulf %2, %2 : vector<8x64xf32>
    %cst = arith.constant dense<0.000000e+00> : vector<8xf32>
    %5 = vector.multi_reduction <add>, %4, %cst [1] : vector<8x64xf32> to vector<8xf32>
    %6 = vector.shape_cast %5 : vector<8xf32> to vector<8x1xf32>
    %7 = arith.mulf %3, %3 : vector<8x32xf32>
    %cst_3 = arith.constant dense<0.000000e+00> : vector<8xf32>
    %8 = vector.multi_reduction <add>, %7, %cst_3 [1] : vector<8x32xf32> to vector<8xf32>
    %9 = vector.shape_cast %8 : vector<8xf32> to vector<8x1xf32>
    %10 = arith.addf %6, %9 : vector<8x1xf32>
    %cst_4 = arith.constant 1.000000e-24 : f32
    %11 = vector.broadcast %cst_4 : f32 to vector<8x1xf32>
    %12 = arith.maximumf %10, %11 : vector<8x1xf32>
    %13 = math.rsqrt %12 : vector<8x1xf32>
    %c0_5 = arith.constant 0 : index
    %c0_6 = arith.constant 0 : index
    %14 = vector.load %arg3[%c0_5, %c0_6] : memref<64x128xbf16, #tpu.memory_space<vmem>>, vector<64x128xbf16>
    %cst_7 = arith.constant dense<0.000000e+00> : vector<8x128xf32>
    %15 = tpu.matmul %0, %14, %cst_7 {dimension_numbers = #tpu.dot_dimension_numbers<[1], [0], [0], [1], [0, 0, 1, 1], [], []>} : vector<8x64xbf16>, vector<64x128xbf16>, vector<8x128xf32> -> vector<8x128xf32>
    %c0_8 = arith.constant 0 : index
    %c0_9 = arith.constant 0 : index
    %16 = vector.load %arg4[%c0_8, %c0_9] : memref<32x128xbf16, #tpu.memory_space<vmem>>, vector<32x128xbf16>
    %cst_10 = arith.constant dense<0.000000e+00> : vector<8x128xf32>
    %17 = tpu.matmul %1, %16, %cst_10 {dimension_numbers = #tpu.dot_dimension_numbers<[1], [0], [0], [1], [0, 0, 1, 1], [], []>} : vector<8x32xbf16>, vector<32x128xbf16>, vector<8x128xf32> -> vector<8x128xf32>
    %18 = arith.addf %15, %17 : vector<8x128xf32>
    %19 = vector.broadcast %13 : vector<8x1xf32> to vector<8x128xf32>
    %20 = arith.mulf %18, %19 : vector<8x128xf32>
    %c0_11 = arith.constant 0 : index
    %c0_12 = arith.constant 0 : index
    %21 = vector.load %arg5[%c0_11, %c0_12] : memref<8x128xf32, #tpu.memory_space<vmem>>, vector<8x128xf32>
    tpu.vector_store %arg5[%c0_11, %c0_12], %20 {strides = array<i32>} : memref<8x128xf32, #tpu.memory_space<vmem>>, vector<8x128xf32>,
    return
  }
  func.func @transform_0(%arg0: i32) -> (i32, i32) {
    %c0_i32 = arith.constant 0 : i32
    %c0_i32_0 = arith.constant 0 : i32
    return %arg0, %c0_i32 : i32, i32
  }
  func.func @transform_1(%arg0: i32) -> (i32, i32) {
    %c0_i32 = arith.constant 0 : i32
    %c0_i32_0 = arith.constant 0 : i32
    return %arg0, %c0_i32 : i32, i32
  }
  func.func @transform_2(%arg0: i32) -> (i32, i32) {
    %c0_i32 = arith.constant 0 : i32
    %c0_i32_0 = arith.constant 0 : i32
    %c0_i32_1 = arith.constant 0 : i32
    return %c0_i32, %c0_i32_0 : i32, i32
  }
  func.func @transform_3(%arg0: i32) -> (i32, i32) {
    %c0_i32 = arith.constant 0 : i32
    %c0_i32_0 = arith.constant 0 : i32
    %c0_i32_1 = arith.constant 0 : i32
    return %c0_i32, %c0_i32_0 : i32, i32
  }
  func.func @transform_4(%arg0: i32) -> (i32, i32) {
    %c0_i32 = arith.constant 0 : i32
    %c0_i32_0 = arith.constant 0 : i32
    return %arg0, %c0_i32 : i32, i32
  }
}

</mosaic_0001>

<bundles_post_ra>
// kernel: multi_head_concat_forward.3
= control target key start
LH: loop header
LB: loop body
LE: loop exit
PB: predicated region body
PF: predicated region fallthrough
CT: control target
= control target key end

     0   :  { %s969_s24 = smov 0   ;;  %s971_s25 = smov 0   ;;  %s1037_s0 = inlined_call_operand.vmem [shape: bf16[8,64], index: 0, kind: input, shape index: {}]   ;;  %s1038_s1 = inlined_call_operand.vmem [shape: bf16[8,32], index: 1, kind: input, shape index: {}]   ;;  %s1039_s2 = inlined_call_operand.vmem [shape: bf16[8,64,32], index: 2, kind: input, shape index: {}]   ;;  %s1040_s3 = inlined_call_operand.vmem [shape: bf16[8,32,32], index: 3, kind: input, shape index: {}]   ;;  %s1041_s4 = inlined_call_operand.vmem [shape: f32[8,1,32], index: 4, kind: input, shape index: {}]   ;;  %s1042_s5 = inlined_call_operand.vmem [shape: bf16[8,32,128], index: 5, kind: input, shape index: {}]   ;;  %s1043_s6 = inlined_call_operand.vmem [shape: f32[8,8,128], index: 6, kind: output, shape index: {0}]   ;;  %s1044_s7 = inlined_call_operand.vmem [shape: f32[8,8,32], index: 7, kind: output, shape index: {1}]  }
   0x1   :  { %s973_s26 = smov 0  }
   0x2 LB: > { %s30_s27 = sadd.s32 1, %s921_s25  ;;  %p802_p0 = scmp.ge.s32.totalorder %s925_s26, 1  ;;  %s925_s26 = sphi %s973_s26, %s18_s26   ;;  %s921_s25 = sphi %s971_s25, %s1046_s25   ;;  %s917_s24 = sphi %s969_s24, %s1045_s24  }
   0x3   : > { %p32_p1 = scmp.ge.s32.totalorder %s30_s27, 8  ;;  %p302_p2 = scmp.lt.s32.totalorder %s925_s26, 9 }
   0x5   : > { %s1048_s27 = smov (%p32_p1, %s30_s27), 0  ;;  %p303_p3 = pnand %p802_p0, %p302_p2 }
   0x6   : > { %p372_p4 = scmp.lt.s32.totalorder (!%p303_p3), %s917_s24, 7  ;;  %v927_v0 = vmov (!%p303_p3), 0.0   ;;  %vm928_vm0 = vmmov (!%p303_p3), 0   ;;  %v414_v6 = vld [vmem:[%s1038_s1] sm:$0xf] (!%p303_p3)  ;;  %vm431_vm1 = vcmask (!%p303_p3), 261120  }
   0x7   : > { %306 = sbr.rel (%p303_p3) target bundleno = 626 (0x272), region = 44  ;;  %847 = vmatprep.subr.bf16.mxu1 (!%p303_p3), %v927_v0  ;;  %839 = vmatprep.subr.bf16.mxu0 (!%p303_p3), %v927_v0  ;;  %v405_v8 = vld [vmem:[%s1037_s0] sm:$0xf] (!%p303_p3)  ;;  %vm499_vm2 = vcmask (!%p303_p3), 523264  }
   0x8   : > { %843 = vmatprep.mubr.msk.bf16.mxu0 (!%p303_p3), %vm928_vm0, %v927_v0  ;;  %855 = vmatprep.mubr.msk.bf16.mxu1 (!%p303_p3), %vm928_vm0, %v927_v0 }
   0xe   : > { %s1050_s24 = smov (!%p372_p4, %s917_s24), 7 }
   0xf   : > { %s825_s28 = sshll.u32 %s1050_s24, 5  ;;  %s826_s29 = sshll.u32 %s1050_s24, 4 }
  0x10   : > { %s376_s9 = scalar_lea.vmem %s1039_s2, %s825_s28  ;;  %s381_s12 = scalar_lea.vmem %s1040_s3, %s826_s29 }
  0x11   : > { %v893_v1 = vld [vmem:[%s376_s9] sm:$0xff]   ;;  %v894_v2 = vld [vmem:[%s376_s9 + $0x8] sm:$0xff]   ;;  %s1002_s15 = scalar_lea.vmem %s1042_s5, %s826_s29  ;;  %v896_v5 = vld [vmem:[%s376_s9 + $0x10] sm:$0xff]   ;;  %s384_s22 = scalar_lea.vmem %s1041_s4, %s1050_s24 }
  0x12   : > { %848 = vmatpush3.bf16.msra.mxu1 %v893_v1  ;;  %v895_v3 = vld [vmem:[%s381_s12] sm:$0xff]   ;;  %v897_v4 = vld [vmem:[%s381_s12 + $0x8] sm:$0xff]   ;;  %v898_v7 = vld [vmem:[%s376_s9 + $0x18] sm:$0xff]   ;;  %s809_s23 = sshll.u32 %s1050_s24, 3 }
  0x13   : > { %849 = vmatprep.subr.bf16.mxu1 %v927_v0  ;;  %840 = vmatpush3.bf16.msra.mxu0 %v895_v3  ;;  %v819_v14 = vld [vmem:[%s384_s22] ss:$0 sm:$0xff]  ;;  %v900_v23 = vld [vmem:[%s1002_s15 + $0x8] sm:$0xff]   ;;  %s403_s30 = scalar_lea.vmem %s1044_s7, %s809_s23  ;;  %s396_s10 = scalar_lea.vmem %s1043_s6, %s809_s23 }
  0x14   : > { %841 = vmatprep.subr.bf16.mxu0 %v927_v0  ;;  %v899_v22 = vld [vmem:[%s1002_s15] sm:$0xff]  }
  0x16   : > { %850 = vmatpush3.bf16.msra.mxu1 %v894_v2 }
  0x17   : > { %851 = vmatprep.subr.bf16.mxu1 %v927_v0  ;;  %842 = vmatpush3.bf16.msra.mxu0 %v897_v4 }
  0x18   : > { %859 = vmatprep.subr.bf16.mxu0 %v927_v0 }
  0x1a   : > { %852 = vmatpush3.bf16.msra.mxu1 %v896_v5  ;;  %844 = vmatmul.mubr.msk.bf16.vlgmr.msra.gmra.mrb[0].mxu0 %vm431_vm1, %v414_v6 }
  0x1b   : > { %853 = vmatprep.subr.bf16.mxu1 %v927_v0  ;;  %863 = vmatprep.mubr.msk.bf16.mxu0 %vm928_vm0, %v927_v0 }
  0x1c   : > { %860 = vmatpush3.bf16.msra.mxu0 %v899_v22 }
  0x1d   : > { %861 = vmatprep.subr.bf16.mxu0 %v927_v0 }
  0x1e   : > { %854 = vmatpush3.bf16.msra.mxu1 %v898_v7 }
  0x20   : > { %862 = vmatpush3.bf16.msra.mxu0 %v900_v23 }
  0x21   : > { %856 = vmatmul.mubr.msk.bf16.vlgmr.msra.gmra.mrb[0].mxu1 %vm499_vm2, %v405_v8 }
  0xed   : > { %v469_v9 = vpop.f32.mrb[0].mxu0 }
  0xee   : > { %v845_v10 = vpop.f32.mrb[1].mxu0 }
  0xef   : > { %v472_v11 = vpop.f32.mrb[2].mxu0 }
  0xf0   : > { %v846_v12 = vpop.f32.mrb[3].mxu0 }
  0xf4   : > { %v537_v13 = vpop.f32.mrb[0].mxu1 }
  0xf5   : > { %v538_v15 = vadd.f32 %v537_v13, %v469_v9  ;;  %v857_v16 = vpop.f32.mrb[1].mxu1 }
  0xf6   : > { %v540_v17 = vpop.f32.mrb[2].mxu1 }
  0xf7   : > { %v550_v18 = vadd.f32 %v819_v14, %v538_v15  ;;  %v858_v19 = vpop.f32.mrb[3].mxu1 }
  0xf9   : > { %v551_v20 = vmul.f32 %v550_v18, %v550_v18 }
  0xfb   : > { %v552_v21 = vsel %vm431_vm1, %v551_v20, 0.0 }
  0xfc   : > { %553 = vadd.xlane.f32.xlu0 %v552_v21 }
 0x189   : > { %v554_v24 = vpop.xlane.xlu0 %553 }
 0x18a   : > { %v555_v25 = vmax.f32 %v554_v24, 1e-24 }
 0x18c   : > { %901 = vrsqrt.f32 %v555_v25 }
 0x196   : > { %v902_v26 = vpop.eup %901 }
 0x197   : > { %v557_v27 = vmul.f32 %v902_v26, %v550_v18 }
 0x199   : > { %v558_v28 = vpack.c.bf16 %v557_v27, %v557_v27  ;;  %619 = vst.msk [vmem:[%s403_s30] sm:$0xff] %vm431_vm1, %v557_v27 }
 0x19b   : > { %864 = vmatmul.mubr.msk.bf16.vlgmr.msra.gmra.mrb[4].mxu0 %vm431_vm1, %v558_v28 }
 0x26e   : > { %v612_v29 = vpop.f32.mrb[4].mxu0 }
 0x26f   : > { %618 = vst [vmem:[%s396_s10] sm:$0xff] %v612_v29  ;;  %v865_v30 = vpop.f32.mrb[5].mxu0 }
 0x270   : > { %v615_v31 = vpop.f32.mrb[6].mxu0 }
 0x271   : > { %v866_v32 = vpop.f32.mrb[7].mxu0 }
 0x272 PF: > { %s18_s26 = sadd.s32 1, %s925_s26   ;;  %s1045_s24 = smov %s921_s25 }
 0x273   : > { %p15_p5 = scmp.ge.s32.totalorder %s18_s26, 10   ;;  %s1046_s25 = smov %s1048_s27 }
 0x275   :  { %17 = sbr.rel (!%p15_p5) target bundleno = 2 (0x2), region = 101 }

// kernel: multi_head_concat_forward.2
= control target key start
LH: loop header
LB: loop body
LE: loop exit
PB: predicated region body
PF: predicated region fallthrough
CT: control target
= control target key end

     0   :  { %v258_v1 = vmov 0.0   ;;  %vm259_vm0 = vmmov 0   ;;  %s322_s0 = inlined_call_operand.vmem [shape: bf16[8,64], index: 0, kind: input, shape index: {}]   ;;  %s323_s1 = inlined_call_operand.vmem [shape: bf16[8,32], index: 1, kind: input, shape index: {}]   ;;  %s324_s2 = inlined_call_operand.vmem [shape: bf16[64,128], index: 2, kind: input, shape index: {}]   ;;  %s325_s3 = inlined_call_operand.vmem [shape: bf16[32,128], index: 3, kind: input, shape index: {}]   ;;  %s326_s4 = inlined_call_operand.hbm [shape: f32[8,128], index: 4, kind: output, shape index: {}]  }
   0x1   :  { %v226_v0 = vld [vmem:[%s324_s2] sm:$0xff]   ;;  %210 = vmatprep.subr.bf16.mxu0 %v258_v1  ;;  %202 = vmatprep.subr.bf16.mxu1 %v258_v1  ;;  %v227_v2 = vld [vmem:[%s324_s2 + $0x8] sm:$0xff]   ;;  %v229_v6 = vld [vmem:[%s324_s2 + $0x10] sm:$0xff]  }
   0x2   :  { %211 = vmatpush3.bf16.msra.mxu0 %v226_v0  ;;  %v228_v3 = vld [vmem:[%s325_s3] sm:$0xff]   ;;  %206 = vmatprep.mubr.msk.bf16.mxu1 %vm259_vm0, %v258_v1  ;;  %v230_v4 = vld [vmem:[%s325_s3 + $0x8] sm:$0xff]  }
   0x3   :  { %212 = vmatprep.subr.bf16.mxu0 %v258_v1  ;;  %218 = vmatprep.mubr.msk.bf16.mxu0 %vm259_vm0, %v258_v1  ;;  %v20_v5 = vld [vmem:[%s323_s1] sm:$0xf] }
   0x4   :  { %203 = vmatpush3.bf16.msra.mxu1 %v228_v3  ;;  %v19_v7 = vld [vmem:[%s322_s0] sm:$0xf]  ;;  %v22_v8 = vunpack.c.l.bf16 %v20_v5 }
   0x5   :  { %204 = vmatprep.subr.bf16.mxu1 %v258_v1 }
   0x6   :  { %213 = vmatpush3.bf16.msra.mxu0 %v227_v2 }
   0x7   :  { %9 = vsyncpa [#allocation3], 0  ;;  %214 = vmatprep.subr.bf16.mxu0 %v258_v1  ;;  %v21_v9 = vunpack.c.l.bf16 %v19_v7  ;;  %vm29_vm1 = vcmask 261120   ;;  %v28_v11 = vmul.f32 %v22_v8, %v22_v8  ;;  %v231_v12 = vld [vmem:[%s324_s2 + $0x18] sm:$0xff]   ;;  %vm24_vm2 = vcmask 523264   ;;  %s260_s0 = smov [#allocation2]  }
   0x8   :  { %205 = vmatpush3.bf16.msra.mxu1 %v230_v4  ;;  %s178_s2 = sshll.u32 %s260_s0, 4  ;;  %s179_s2 = int_to_ptr.vmem [resolvable:$true] %s178_s2 }
   0x9   :  { %v23_v10 = vmul.f32 %v21_v9, %v21_v9  ;;  %v30_v14 = vsel %vm29_vm1, %v28_v11, 0.0  ;;  %s234_s29 = scalar_lea.vmem %s179_s2, 128  ;;  %p239_p1 = scmp.lt.s32.totalorder %s179_s2, %s179_s2 }
   0xa   :  { %215 = vmatpush3.bf16.msra.mxu0 %v229_v6  ;;  %p235_p0 = scmp.ne.s32.totalorder %s179_s2, %s234_s29  ;;  %p240_p2 = scmp.lt.s32.totalorder %s234_s29, %s234_s29 }
   0xb   :  { %216 = vmatprep.subr.bf16.mxu0 %v258_v1  ;;  %207 = vmatmul.mubr.msk.bf16.vlgmr.msra.gmra.mrb[0].mxu1 %vm29_vm1, %v20_v5  ;;  %v25_v13 = vsel %vm24_vm2, %v23_v10, 0.0 }
   0xc   :  { %26 = vadd.xlane.f32.xlu0 %v25_v13  ;;  %p241_p3 = por %p240_p2, %p239_p1 }
   0xe   :  { %217 = vmatpush3.bf16.msra.mxu0 %v231_v12  ;;  %p242_p4 = pnand %p241_p3, %p235_p0 }
  0x10   :  { %31 = vadd.xlane.f32.xlu0 %v30_v14 }
  0x11   :  { %219 = vmatmul.mubr.msk.bf16.vlgmr.msra.gmra.mrb[0].mxu0 %vm24_vm2, %v19_v7 }
  0x99   :  { %v27_v15 = vpop.xlane.xlu0 %26 }
  0x9d   :  { %v32_v16 = vpop.xlane.xlu0 %31 }
  0x9e   :  { %v33_v17 = vadd.f32 %v32_v16, %v27_v15 }
  0xa0   :  { %v34_v18 = vmax.f32 %v33_v17, 1e-24 }
  0xa2   :  { %232 = vrsqrt.f32 %v34_v18 }
  0xac   :  { %v233_v26 = vpop.eup %232 }
  0xde   :  { %v97_v19 = vpop.f32.mrb[0].mxu1 }
  0xdf   :  { %v208_v20 = vpop.f32.mrb[1].mxu1 }
  0xe0   :  { %v100_v21 = vpop.f32.mrb[2].mxu1 }
  0xe1   :  { %v209_v22 = vpop.f32.mrb[3].mxu1 }
  0xe4   :  { %v164_v23 = vpop.f32.mrb[0].mxu0 }
  0xe5   :  { %v165_v24 = vadd.f32 %v164_v23, %v97_v19  ;;  %v220_v25 = vpop.f32.mrb[1].mxu0 }
  0xe6   :  { %v167_v27 = vpop.f32.mrb[2].mxu0 }
  0xe7   :  { %v221_v28 = vpop.f32.mrb[3].mxu0  ;;  %v170_v29 = vmul.f32 %v233_v26, %v165_v24 }
  0xe9   :  { %171 = vst [vmem:[#allocation2] sm:$0xff] %v170_v29 }
  0xea   :  { %245 = shalt.err (!%p242_p4)
}
  0xeb   :  { %s246_s6 = scalar_lea.hbm %s326_s4, 128 }
  0xec   :  { %p247_p5 = scmp.ne.s32.totalorder %s326_s4, %s246_s6  ;;  %p250_p6 = scmp.lt.u32.totalorder %s246_s6, %s326_s4 }
  0xee   :  { %p252_p7 = pnand %p250_p6, %p247_p5 }
  0xf0   :  { %255 = shalt.err (!%p252_p7)
}
  0xf1   :  { %181 = dma.vmem_to_hbm [thread:$0]  %s179_s2, 128, %s326_s4, [#allocation3]  }
  0xf2   :  { %256 = dma.done.wait [#allocation3], 128  }
  0xf3   :  { %257 = vsyncadd [#allocation3], 4294967168 }
  0xf4   :  { %185 = vsyncpa [#allocation3], 1 }

</bundles_post_ra>
